<compile_context>
chip_gen: v6e
topology: v6e:2x2x1
jax: 0.10.0
libtpu: 0.0.40
codegen_flags: <defaults>
</compile_context>

<pallas_src>
import jax
import jax.numpy as jnp
from jax.experimental import pallas as pl
from jax.experimental.pallas import tpu as pltpu

HIDDEN = 400


def _round_up(x, m):
    return (x + m - 1) // m * m


def _disc_kernel(s_ref, a_ref, w1_ref, b1_ref, w2_ref, b2_ref, o_ref, x_scr):
    # s:   (TILE_N, S)    f32       a:   (TILE_N, A)    f32
    # w1:  (S+A, H)       bf16      b1:  (1, H)         f32
    # w2:  (1, H)         bf16      b2:  (1,)           f32 (SMEM)
    # o:   (1, 1, TILE_N) f32       x_scr: (TILE_N, S+A) f32 VMEM scratch
    S = s_ref.shape[1]

    # Fused concat: two (masked) lane-slice stores into one VMEM scratch,
    # then a single K=(S+A) bf16 operand for the MXU.
    x_scr[:, :S] = s_ref[...]
    x_scr[:, S:] = a_ref[...]
    x = x_scr[...].astype(jnp.bfloat16)                   # (TILE_N, S+A) bf16

    # Layer 1 (+ eval-mode Dropout) + ReLU, f32 accumulation on the MXU.
    h = jnp.dot(x, w1_ref[...], preferred_element_type=jnp.float32) + b1_ref[...]
    h = jnp.maximum(h, 0.0)                                # (TILE_N, H) f32

    # Layer 2 (output width 1), produced lane-dense:
    # (1,H) x (TILE_N,H)^T -> (1,TILE_N).
    y = jnp.einsum("oh,nh->on", w2_ref[...], h.astype(jnp.bfloat16),
                   preferred_element_type=jnp.float32)
    y = y + b2_ref[0]

    # Exact sigmoid (stays strictly inside (0,1)).
    o_ref[...] = (1.0 / (1.0 + jnp.exp(-y))).reshape(1, 1, -1)


def discriminator_forward(state, action, params, *, tile_n=2048):
    """state: (B, T, S) f32, action: (B, T, A) f32 -> (B, T) f32 in (0, 1)."""
    w1, b1, w2, b2 = params
    B, T, S = state.shape
    A = action.shape[-1]
    H = w1.shape[1]
    N = B * T

    # Row tile: multiple of 128 (lane-dense output + sublane alignment).
    # Cap at round_up(N/2, 128) so moderate N gives >= 2 grid steps (keeps
    # both v7x TensorCores busy); a big default amortizes grid-step overhead.
    tile_cap = _round_up(max(tile_n, 128), 128)
    tile_n = min(tile_cap, max(128, _round_up(pl.cdiv(N, 2), 128)))
    num_tiles = pl.cdiv(N, tile_n)

    # Reshape only (free) -- no cast/pad pass over the activations. The
    # partial last input block computes junk rows; the [:N] slice drops them.
    s2d = state.reshape(N, S)
    a2d = action.reshape(N, A)
    w1b = w1.astype(jnp.bfloat16)                   # (S+A, H)  MXU operand
    b1r = b1.reshape(1, H).astype(jnp.float32)      # (1, H)
    w2r = w2.reshape(1, H).astype(jnp.bfloat16)     # (1, H)
    b2s = b2.reshape(1).astype(jnp.float32)         # (1,)  -> SMEM scalar

    out = pl.pallas_call(
        _disc_kernel,
        out_shape=jax.ShapeDtypeStruct((num_tiles, 1, tile_n), jnp.float32),
        grid=(num_tiles,),
        in_specs=[
            pl.BlockSpec((tile_n, S), lambda i: (i, 0)),        # state tile (pipelined)
            pl.BlockSpec((tile_n, A), lambda i: (i, 0)),        # action tile (pipelined)
            pl.BlockSpec((S + A, H), lambda i: (0, 0)),         # full W1 (VMEM-resident)
            pl.BlockSpec((1, H), lambda i: (0, 0)),             # b1
            pl.BlockSpec((1, H), lambda i: (0, 0)),             # w2 row
            pl.BlockSpec(memory_space=pltpu.MemorySpace.SMEM),  # b2 scalar
        ],
        out_specs=pl.BlockSpec((1, 1, tile_n), lambda i: (i, 0, 0)),
        scratch_shapes=[pltpu.VMEM((tile_n, S + A), jnp.float32)],
        compiler_params=pltpu.CompilerParams(
            dimension_semantics=("parallel",),
            # Covers big tiles on v5e (16 MiB scoped default); matches the
            # v6e/v7x default and is well under v7x's 64 MiB/TC physical VMEM.
            vmem_limit_bytes=32 * 1024 * 1024,
        ),
    )(s2d, a2d, w1b, b1r, w2r, b2s)

    return out.reshape(-1)[:N].reshape(B, T)


def init_params(key, state_dim, action_dim, hidden=HIDDEN):
    """Deterministic params, mimicking PyTorch Linear default U(-1/sqrt(fan_in), ...)."""
    in_dim = state_dim + action_dim
    k1, k2, k3, k4 = jax.random.split(key, 4)
    bnd1 = 1.0 / jnp.sqrt(in_dim)
    bnd2 = 1.0 / jnp.sqrt(hidden)
    w1 = jax.random.uniform(k1, (in_dim, hidden), jnp.float32, -bnd1, bnd1)
    b1 = jax.random.uniform(k2, (hidden,), jnp.float32, -bnd1, bnd1)
    w2 = jax.random.uniform(k3, (hidden, 1), jnp.float32, -bnd2, bnd2)
    b2 = jax.random.uniform(k4, (1,), jnp.float32, -bnd2, bnd2)
    return (w1, b1, w2, b2)


if __name__ == "__main__":
    key = jax.random.PRNGKey(0)
    kp, ks, ka = jax.random.split(key, 3)

    B, T = 2, 8
    state_dim, action_dim = 12, 4

    state = jax.random.normal(ks, (B, T, state_dim), jnp.float32)
    action = jax.random.normal(ka, (B, T, action_dim), jnp.float32)
    params = init_params(kp, state_dim, action_dim)

    out = jax.jit(discriminator_forward)(state, action, params)
    out = jax.block_until_ready(out)

    # Pure-JAX f32 reference of the same math (eval-mode dropout).
    w1, b1, w2, b2 = params
    x = jnp.concatenate([state, action], axis=2).reshape(-1, state_dim + action_dim)
    ref = jax.nn.sigmoid(jnp.maximum(x @ w1 + b1, 0.0) @ w2 + b2).reshape(B, T)

    assert out.shape == (B, T)
    # Tolerance accounts for bf16 MXU operands (f32 accumulation, exact sigmoid).
    assert jnp.allclose(out, ref, atol=2e-2), float(jnp.max(jnp.abs(out - ref)))
    assert bool(jnp.all((out > 0.0) & (out < 1.0)))

    print("KERNEL_OK")
</pallas_src>

<mosaic_0001>
module attributes {stable_mosaic.version = 11 : i64} {
  func.func @_disc_kernel(%arg0: i32, %arg1: memref<128x12xf32, #tpu.memory_space<vmem>>, %arg2: memref<128x4xf32, #tpu.memory_space<vmem>>, %arg3: memref<16x400xbf16, #tpu.memory_space<vmem>>, %arg4: memref<1x400xf32, #tpu.memory_space<vmem>>, %arg5: memref<1x400xbf16, #tpu.memory_space<vmem>>, %arg6: memref<1xf32, #tpu.memory_space<smem>>, %arg7: memref<1x1x128xf32, #tpu.memory_space<vmem>>, %arg8: memref<128x16xf32, #tpu.memory_space<vmem>>) attributes {dimension_semantics = [#tpu.dimension_semantics<parallel>], iteration_bounds = array<i64: 1>, scalar_prefetch = 0 : i64, scratch_operands = 1 : i64, tpu.core_type = #tpu.core_type<tc>, window_params = [{transform_indices = @transform_0, window_bounds = array<i64: 128, 12>}, {transform_indices = @transform_1, window_bounds = array<i64: 128, 4>}, {pipeline_mode = #tpu.pipeline_mode<synchronous>, transform_indices = @transform_2, window_bounds = array<i64: 16, 400>}, {pipeline_mode = #tpu.pipeline_mode<synchronous>, transform_indices = @transform_3, window_bounds = array<i64: 1, 400>}, {pipeline_mode = #tpu.pipeline_mode<synchronous>, transform_indices = @transform_4, window_bounds = array<i64: 1, 400>}, {transform_indices = @transform_5, window_bounds = array<i64: 1>}, {transform_indices = @transform_6, window_bounds = array<i64: 1, 1, 128>}]} {
    %c0 = arith.constant 0 : index
    %c0_0 = arith.constant 0 : index
    %0 = vector.load %arg1[%c0, %c0_0] : memref<128x12xf32, #tpu.memory_space<vmem>>, vector<128x12xf32>
    %c0_1 = arith.constant 0 : index
    %c0_2 = arith.constant 0 : index
    %1 = vector.load %arg8[%c0_1, %c0_2] : memref<128x16xf32, #tpu.memory_space<vmem>>, vector<128x12xf32>
    tpu.vector_store %arg8[%c0_1, %c0_2], %0 {strides = array<i32>} : memref<128x16xf32, #tpu.memory_space<vmem>>, vector<128x12xf32>,
    %c0_3 = arith.constant 0 : index
    %c0_4 = arith.constant 0 : index
    %2 = vector.load %arg2[%c0_3, %c0_4] : memref<128x4xf32, #tpu.memory_space<vmem>>, vector<128x4xf32>
    %c0_5 = arith.constant 0 : index
    %c12 = arith.constant 12 : index
    %3 = vector.load %arg8[%c0_5, %c12] : memref<128x16xf32, #tpu.memory_space<vmem>>, vector<128x4xf32>
    tpu.vector_store %arg8[%c0_5, %c12], %2 {strides = array<i32>} : memref<128x16xf32, #tpu.memory_space<vmem>>, vector<128x4xf32>,
    %c0_6 = arith.constant 0 : index
    %c0_7 = arith.constant 0 : index
    %4 = vector.load %arg8[%c0_6, %c0_7] : memref<128x16xf32, #tpu.memory_space<vmem>>, vector<128x16xf32>
    %5 = arith.truncf %4 : vector<128x16xf32> to vector<128x16xbf16>
    %c0_8 = arith.constant 0 : index
    %c0_9 = arith.constant 0 : index
    %6 = vector.load %arg3[%c0_8, %c0_9] : memref<16x400xbf16, #tpu.memory_space<vmem>>, vector<16x400xbf16>
    %cst = arith.constant dense<0.000000e+00> : vector<128x400xf32>
    %7 = tpu.matmul %5, %6, %cst {dimension_numbers = #tpu.dot_dimension_numbers<[1], [0], [0], [1], [0, 0, 1, 1], [], []>} : vector<128x16xbf16>, vector<16x400xbf16>, vector<128x400xf32> -> vector<128x400xf32>
    %c0_10 = arith.constant 0 : index
    %c0_11 = arith.constant 0 : index
    %8 = vector.load %arg4[%c0_10, %c0_11] : memref<1x400xf32, #tpu.memory_space<vmem>>, vector<1x400xf32>
    %9 = vector.broadcast %8 : vector<1x400xf32> to vector<128x400xf32>
    %10 = arith.addf %7, %9 : vector<128x400xf32>
    %cst_12 = arith.constant 0.000000e+00 : f32
    %11 = vector.broadcast %cst_12 : f32 to vector<128x400xf32>
    %12 = arith.maximumf %10, %11 : vector<128x400xf32>
    %c0_13 = arith.constant 0 : index
    %c0_14 = arith.constant 0 : index
    %13 = vector.load %arg5[%c0_13, %c0_14] : memref<1x400xbf16, #tpu.memory_space<vmem>>, vector<1x400xbf16>
    %14 = arith.truncf %12 : vector<128x400xf32> to vector<128x400xbf16>
    "tpu.trace_start"() <{level = 10 : i32, message = "oh,nh->on"}> : () -> ()
    %cst_15 = arith.constant dense<0.000000e+00> : vector<1x128xf32>
    %15 = tpu.matmul %13, %14, %cst_15 {dimension_numbers = #tpu.dot_dimension_numbers<[1], [1], [0], [0], [0, 0, 1, 0], [], []>} : vector<1x400xbf16>, vector<128x400xbf16>, vector<1x128xf32> -> vector<1x128xf32>
    "tpu.trace_stop"() : () -> ()
    %c0_16 = arith.constant 0 : index
    %16 = memref.load %arg6[%c0_16] : memref<1xf32, #tpu.memory_space<smem>>
    %17 = vector.broadcast %16 : f32 to vector<1x128xf32>
    %18 = arith.addf %15, %17 : vector<1x128xf32>
    %cst_17 = arith.constant 0.000000e+00 : f32
    %19 = vector.broadcast %cst_17 : f32 to vector<1x128xf32>
    %20 = arith.subf %19, %18 : vector<1x128xf32>
    %21 = math.exp %20 : vector<1x128xf32>
    %cst_18 = arith.constant 1.000000e+00 : f32
    %22 = vector.broadcast %cst_18 : f32 to vector<1x128xf32>
    %23 = arith.addf %22, %21 : vector<1x128xf32>
    %cst_19 = arith.constant 1.000000e+00 : f32
    %24 = vector.broadcast %cst_19 : f32 to vector<1x128xf32>
    %25 = arith.divf %24, %23 : vector<1x128xf32>
    %26 = vector.shape_cast %25 : vector<1x128xf32> to vector<1x1x128xf32>
    %c0_20 = arith.constant 0 : index
    %c0_21 = arith.constant 0 : index
    %c0_22 = arith.constant 0 : index
    %27 = vector.load %arg7[%c0_20, %c0_21, %c0_22] : memref<1x1x128xf32, #tpu.memory_space<vmem>>, vector<1x1x128xf32>
    tpu.vector_store %arg7[%c0_20, %c0_21, %c0_22], %26 {strides = array<i32>} : memref<1x1x128xf32, #tpu.memory_space<vmem>>, vector<1x1x128xf32>,
    return
  }
  func.func @transform_0(%arg0: i32) -> (i32, i32) {
    %c0_i32 = arith.constant 0 : i32
    %c0_i32_0 = arith.constant 0 : i32
    return %arg0, %c0_i32 : i32, i32
  }
  func.func @transform_1(%arg0: i32) -> (i32, i32) {
    %c0_i32 = arith.constant 0 : i32
    %c0_i32_0 = arith.constant 0 : i32
    return %arg0, %c0_i32 : i32, i32
  }
  func.func @transform_2(%arg0: i32) -> (i32, i32) {
    %c0_i32 = arith.constant 0 : i32
    %c0_i32_0 = arith.constant 0 : i32
    %c0_i32_1 = arith.constant 0 : i32
    return %c0_i32, %c0_i32_0 : i32, i32
  }
  func.func @transform_3(%arg0: i32) -> (i32, i32) {
    %c0_i32 = arith.constant 0 : i32
    %c0_i32_0 = arith.constant 0 : i32
    %c0_i32_1 = arith.constant 0 : i32
    return %c0_i32, %c0_i32_0 : i32, i32
  }
  func.func @transform_4(%arg0: i32) -> (i32, i32) {
    %c0_i32 = arith.constant 0 : i32
    %c0_i32_0 = arith.constant 0 : i32
    %c0_i32_1 = arith.constant 0 : i32
    return %c0_i32, %c0_i32_0 : i32, i32
  }
  func.func @transform_5(%arg0: i32) -> i32 {
    %c0_i32 = arith.constant 0 : i32
    %c0_i32_0 = arith.constant 0 : i32
    return %c0_i32 : i32
  }
  func.func @transform_6(%arg0: i32) -> (i32, i32, i32) {
    %c0_i32 = arith.constant 0 : i32
    %c0_i32_0 = arith.constant 0 : i32
    %c0_i32_1 = arith.constant 0 : i32
    return %arg0, %c0_i32, %c0_i32_0 : i32, i32, i32
  }
}

</mosaic_0001>

<bundles_post_ra>
// kernel: discriminator_forward.1
= control target key start
LH: loop header
LB: loop body
LE: loop exit
PB: predicated region body
PF: predicated region fallthrough
CT: control target
= control target key end

     0   :  { %v764_v2 = vmov 0   ;;  %s765_s25 = smov 12   ;;  %vm41_vm0 = vcmask 97280   ;;  %vm138_vm1 = vcmask 130144   ;;  %vm225_vm2 = vcmask 130048   ;;  %s1178_s1 = inlined_call_operand.vmem [shape: f32[16,4], index: 1, kind: input, shape index: {}]   ;;  %s1179_s0 = inlined_call_operand.vmem [shape: f32[16,12], index: 0, kind: input, shape index: {}]   ;;  %s1180_s2 = inlined_call_operand.vmem [shape: bf16[16,400], index: 2, kind: input, shape index: {}]   ;;  %s1181_s3 = inlined_call_operand.vmem [shape: f32[1,400], index: 3, kind: input, shape index: {}]   ;;  %s1182_s4 = inlined_call_operand.vmem [shape: bf16[1,400], index: 4, kind: input, shape index: {}]   ;;  %s1183_s5 = inlined_call_operand.<no memory space> [shape: f32[1], index: 5, kind: input, shape index: {}]   ;;  %s1184_s6 = inlined_call_operand.vmem [shape: f32[1,1,128], index: 6, kind: output, shape index: {}]  }
   0x1   :  { %v58_v0 = vld [vmem:[%s1178_s1] sm:$0xff]  ;;  %v60_v1 = vld [vmem:[%s1178_s1 + $0x10] sm:$0xff]  ;;  %282 = vmatprep.mubr.bf16.mxu0 %v764_v2  ;;  %395 = vmatprep.mubr.bf16.mxu1 %v764_v2  ;;  %v59_v3 = vld [vmem:[%s1178_s1 + $0x8] sm:$0xff] }
   0x2   :  { %90 = vrot.lane.b32.xlu0 %v58_v0, %s765_s25  ;;  %94 = vrot.lane.b32.xlu1 %v60_v1, %s765_s25  ;;  %v61_v4 = vld [vmem:[%s1178_s1 + $0x18] sm:$0xff]  ;;  %v63_v5 = vld [vmem:[%s1178_s1 + $0x28] sm:$0xff] }
   0x3   :  { %v62_v6 = vld [vmem:[%s1178_s1 + $0x20] sm:$0xff]  ;;  %v27_v8 = vld [vmem:[%s1179_s0 + $0x10] sm:$0xff]  ;;  %v26_v9 = vld [vmem:[%s1179_s0 + $0x8] sm:$0xff] }
   0x4   :  { %v25_v7 = vld [vmem:[%s1179_s0] sm:$0xff]  ;;  %44 = vst.msk [vmem:[#allocation2 + $0x10] sm:$0xff] %vm41_vm0, %v27_v8  ;;  %43 = vst.msk [vmem:[#allocation2 + $0x8] sm:$0xff] %vm41_vm0, %v26_v9  ;;  %v28_v10 = vld [vmem:[%s1179_s0 + $0x18] sm:$0xff] }
   0x5   :  { %42 = vst.msk [vmem:[#allocation2] sm:$0xff] %vm41_vm0, %v25_v7  ;;  %v65_v11 = vld [vmem:[%s1178_s1 + $0x38] sm:$0xff]  ;;  %v64_v12 = vld [vmem:[%s1178_s1 + $0x30] sm:$0xff]  ;;  %45 = vst.msk [vmem:[#allocation2 + $0x18] sm:$0xff] %vm41_vm0, %v28_v10 }
   0x6   :  { %92 = vrot.lane.b32.xlu0 %v59_v3, %s765_s25  ;;  %96 = vrot.lane.b32.xlu1 %v61_v4, %s765_s25  ;;  %v754_v13 = vld [vmem:[%s1180_s2 + $0x4] ss:$16 sps:$4 sm:$0xff]   ;;  %v756_v14 = vld [vmem:[%s1180_s2 + $0xc] ss:$16 sps:$4 sm:$0xff]  }
   0x7   :  { %v758_v15 = vld [vmem:[%s1180_s2] ss:$16 sps:$4 sm:$0xff]   ;;  %264 = vmatprep.subr.bf16.mxu0 %v754_v13  ;;  %v759_v16 = vld [vmem:[%s1180_s2 + $0x8] ss:$16 sps:$4 sm:$0xff]   ;;  %377 = vmatprep.subr.bf16.mxu1 %v756_v14  ;;  %v185_v14 = vlaneseq }
   0x8   :  { %v30_v17 = vld [vmem:[%s1179_s0 + $0x28] sm:$0xff]  ;;  %v29_v18 = vld [vmem:[%s1179_s0 + $0x20] sm:$0xff]  ;;  %265 = vmatpush1.bf16.msra.mxu0 %v758_v15  ;;  %v32_v19 = vld [vmem:[%s1179_s0 + $0x38] sm:$0xff]  ;;  %378 = vmatpush1.bf16.msra.mxu1 %v759_v16 }
   0x9   :  { %47 = vst.msk [vmem:[#allocation2 + $0x28] sm:$0xff] %vm41_vm0, %v30_v17  ;;  %46 = vst.msk [vmem:[#allocation2 + $0x20] sm:$0xff] %vm41_vm0, %v29_v18  ;;  %v31_v20 = vld [vmem:[%s1179_s0 + $0x30] sm:$0xff]  ;;  %v67_v21 = vld [vmem:[%s1178_s1 + $0x48] sm:$0xff]  ;;  %v186_v15 = vshrl.u32 %v185_v14, 7 }
   0xa   :  { %100 = vrot.lane.b32.xlu1 %v63_v5, %s765_s25  ;;  %98 = vrot.lane.b32.xlu0 %v62_v6, %s765_s25  ;;  %49 = vst.msk [vmem:[#allocation2 + $0x38] sm:$0xff] %vm41_vm0, %v32_v19  ;;  %48 = vst.msk [vmem:[#allocation2 + $0x30] sm:$0xff] %vm41_vm0, %v31_v20  ;;  %v66_v22 = vld [vmem:[%s1178_s1 + $0x40] sm:$0xff]  ;;  %v69_v23 = vld [vmem:[%s1178_s1 + $0x58] sm:$0xff]  ;;  %v766_v19 = vmov 1966171168  }
   0xb   :  { %v68_v24 = vld [vmem:[%s1178_s1 + $0x50] sm:$0xff]  ;;  %v34_v25 = vld [vmem:[%s1179_s0 + $0x48] sm:$0xff]  ;;  %v33_v26 = vld [vmem:[%s1179_s0 + $0x40] sm:$0xff]  ;;  %v187_v16 = vsub.s32 0, %v186_v15  ;;  %v195_v17 = vsub.s32 2, %v186_v15  ;;  %v585_v20 = vunpack.c.l.s4 %v766_v19 }
   0xc   :  { %51 = vst.msk [vmem:[#allocation2 + $0x48] sm:$0xff] %vm41_vm0, %v34_v25  ;;  %50 = vst.msk [vmem:[#allocation2 + $0x40] sm:$0xff] %vm41_vm0, %v33_v26  ;;  %v71_v27 = vld [vmem:[%s1178_s1 + $0x68] sm:$0xff]  ;;  %v70_v28 = vld [vmem:[%s1178_s1 + $0x60] sm:$0xff] }
   0xd   :  { %v73_v29 = vld [vmem:[%s1178_s1 + $0x78] sm:$0xff]  ;;  %v72_v30 = vld [vmem:[%s1178_s1 + $0x70] sm:$0xff]  ;;  %v38_v33 = vld [vmem:[%s1179_s0 + $0x68] sm:$0xff] }
   0xe   :  { %104 = vrot.lane.b32.xlu1 %v65_v11, %s765_s25  ;;  %102 = vrot.lane.b32.xlu0 %v64_v12, %s765_s25  ;;  %v36_v31 = vld [vmem:[%s1179_s0 + $0x58] sm:$0xff]  ;;  %v35_v32 = vld [vmem:[%s1179_s0 + $0x50] sm:$0xff]  ;;  %55 = vst.msk [vmem:[#allocation2 + $0x68] sm:$0xff] %vm41_vm0, %v38_v33 }
   0xf   :  { %53 = vst.msk [vmem:[#allocation2 + $0x58] sm:$0xff] %vm41_vm0, %v36_v31  ;;  %52 = vst.msk [vmem:[#allocation2 + $0x50] sm:$0xff] %vm41_vm0, %v35_v32  ;;  %v37_v34 = vld [vmem:[%s1179_s0 + $0x60] sm:$0xff]  ;;  %v40_v35 = vld [vmem:[%s1179_s0 + $0x78] sm:$0xff] }
  0x10   :  { %54 = vst.msk [vmem:[#allocation2 + $0x60] sm:$0xff] %vm41_vm0, %v37_v34  ;;  %v39_v36 = vld [vmem:[%s1179_s0 + $0x70] sm:$0xff]  ;;  %57 = vst.msk [vmem:[#allocation2 + $0x78] sm:$0xff] %vm41_vm0, %v40_v35  ;;  %v183_v18 = vld [vmem:[%s1181_s3] sm:$0xf] }
  0x11   :  { %56 = vst.msk [vmem:[#allocation2 + $0x70] sm:$0xff] %vm41_vm0, %v39_v36  ;;  %v741_v25 = vld.sshfl [vmem:[%s1182_s4] sm:$0x33 pattern:$0x75316420] }
  0x12   :  { %108 = vrot.lane.b32.xlu1 %v67_v21, %s765_s25  ;;  %106 = vrot.lane.b32.xlu0 %v66_v22, %s765_s25  ;;  %v191_v21 = vsub.s32 1, %v186_v15  ;;  %v199_v22 = vsub.s32 3, %v186_v15  ;;  %v583_v26 = vcombine.high %v741_v25, %v741_v25 }
  0x14   :  { %v1002_v31 = vrot.slane %v183_v18, %v199_v22 }
  0x16   :  { %112 = vrot.lane.b32.xlu1 %v69_v23, %s765_s25  ;;  %110 = vrot.lane.b32.xlu0 %v68_v24, %s765_s25  ;;  %v993_v23 = vrot.slane %v183_v18, %v187_v16  ;;  %v995_v24 = vrot.slane %v183_v18, %v195_v17 }
  0x1a   :  { %116 = vrot.lane.b32.xlu1 %v71_v27, %s765_s25  ;;  %114 = vrot.lane.b32.xlu0 %v70_v28, %s765_s25 }
  0x1e   :  { %120 = vrot.lane.b32.xlu1 %v73_v29, %s765_s25  ;;  %118 = vrot.lane.b32.xlu0 %v72_v30, %s765_s25  ;;  %v1000_v30 = vrot.slane %v183_v18, %v191_v21 }
  0x74   :  { %v91_v37 = vpop.permute.xlu0 %90  ;;  %v95_v38 = vpop.permute.xlu1 %94 }
  0x75   :  { %139 = vst.msk [vmem:[#allocation2] sm:$0xff] %vm138_vm1, %v91_v37  ;;  %141 = vst.msk [vmem:[#allocation2 + $0x10] sm:$0xff] %vm138_vm1, %v95_v38 }
  0x78   :  { %v93_v39 = vpop.permute.xlu0 %92  ;;  %v97_v40 = vpop.permute.xlu1 %96 }
  0x79   :  { %140 = vst.msk [vmem:[#allocation2 + $0x8] sm:$0xff] %vm138_vm1, %v93_v39  ;;  %142 = vst.msk [vmem:[#allocation2 + $0x18] sm:$0xff] %vm138_vm1, %v97_v40 }
  0x7c   :  { %v101_v41 = vpop.permute.xlu1 %100  ;;  %v99_v42 = vpop.permute.xlu0 %98  ;;  %v155_v43 = vld [vmem:[#allocation2] sm:$0xff]  ;;  %v157_v50 = vld [vmem:[#allocation2 + $0x10] sm:$0xff] }
  0x7d   :  { %144 = vst.msk [vmem:[#allocation2 + $0x28] sm:$0xff] %vm138_vm1, %v101_v41  ;;  %143 = vst.msk [vmem:[#allocation2 + $0x20] sm:$0xff] %vm138_vm1, %v99_v42 }
  0x80   :  { %v156_v44 = vld [vmem:[#allocation2 + $0x8] sm:$0xff]  ;;  %v105_v45 = vpop.permute.xlu1 %104  ;;  %v103_v46 = vpop.permute.xlu0 %102  ;;  %v158_v51 = vld [vmem:[#allocation2 + $0x18] sm:$0xff] }
  0x81   :  { %v171_v47 = vpack.c.bf16 %v156_v44, %v155_v43  ;;  %146 = vst.msk [vmem:[#allocation2 + $0x38] sm:$0xff] %vm138_vm1, %v105_v45  ;;  %145 = vst.msk [vmem:[#allocation2 + $0x30] sm:$0xff] %vm138_vm1, %v103_v46  ;;  %v172_v54 = vpack.c.bf16 %v158_v51, %v157_v50 }
  0x83   :  { %725 = vmatmul.mubr.msk.bf16.vlgmr.msra.gmra.mxu0 %vm225_vm2, %v171_v47  ;;  %733 = vmatmul.mubr.msk.bf16.vlgmr.msra.gmra.mxu1 %vm225_vm2, %v171_v47 }
  0x84   :  { %292 = vmatprep.mubr.bf16.mxu0 %v764_v2  ;;  %405 = vmatprep.mubr.bf16.mxu1 %v764_v2  ;;  %v109_v48 = vpop.permute.xlu1 %108  ;;  %v107_v49 = vpop.permute.xlu0 %106  ;;  %v159_v55 = vld [vmem:[#allocation2 + $0x20] sm:$0xff]  ;;  %v160_v56 = vld [vmem:[#allocation2 + $0x28] sm:$0xff] }
  0x85   :  { %148 = vst.msk [vmem:[#allocation2 + $0x48] sm:$0xff] %vm138_vm1, %v109_v48  ;;  %147 = vst.msk [vmem:[#allocation2 + $0x40] sm:$0xff] %vm138_vm1, %v107_v49  ;;  %v173_v59 = vpack.c.bf16 %v160_v56, %v159_v55 }
  0x88   :  { %v113_v52 = vpop.permute.xlu1 %112  ;;  %v111_v53 = vpop.permute.xlu0 %110  ;;  %v161_v62 = vld [vmem:[#allocation2 + $0x30] sm:$0xff]  ;;  %v162_v63 = vld [vmem:[#allocation2 + $0x38] sm:$0xff] }
  0x89   :  { %150 = vst.msk [vmem:[#allocation2 + $0x58] sm:$0xff] %vm138_vm1, %v113_v52  ;;  %149 = vst.msk [vmem:[#allocation2 + $0x50] sm:$0xff] %vm138_vm1, %v111_v53  ;;  %v174_v0 = vpack.c.bf16 %v162_v63, %v161_v62 }
  0x8b   :  { %726 = vmatmul.mubr.msk.bf16.gmra.mxu0 %vm225_vm2, %v172_v54  ;;  %734 = vmatmul.mubr.msk.bf16.gmra.mxu1 %vm225_vm2, %v172_v54 }
  0x8c   :  { %302 = vmatprep.mubr.bf16.mxu0 %v764_v2  ;;  %415 = vmatprep.mubr.bf16.mxu1 %v764_v2  ;;  %v117_v57 = vpop.permute.xlu1 %116  ;;  %v115_v58 = vpop.permute.xlu0 %114  ;;  %v163_v1 = vld [vmem:[#allocation2 + $0x40] sm:$0xff]  ;;  %v164_v3 = vld [vmem:[#allocation2 + $0x48] sm:$0xff] }
  0x8d   :  { %152 = vst.msk [vmem:[#allocation2 + $0x68] sm:$0xff] %vm138_vm1, %v117_v57  ;;  %151 = vst.msk [vmem:[#allocation2 + $0x60] sm:$0xff] %vm138_vm1, %v115_v58  ;;  %v175_v4 = vpack.c.bf16 %v164_v3, %v163_v1 }
  0x90   :  { %v121_v60 = vpop.permute.xlu1 %120  ;;  %v119_v61 = vpop.permute.xlu0 %118  ;;  %v165_v5 = vld [vmem:[#allocation2 + $0x50] sm:$0xff]  ;;  %v166_v6 = vld [vmem:[#allocation2 + $0x58] sm:$0xff] }
  0x91   :  { %154 = vst.msk [vmem:[#allocation2 + $0x78] sm:$0xff] %vm138_vm1, %v121_v60  ;;  %153 = vst.msk [vmem:[#allocation2 + $0x70] sm:$0xff] %vm138_vm1, %v119_v61  ;;  %v176_v7 = vpack.c.bf16 %v166_v6, %v165_v5 }
  0x93   :  { %727 = vmatmul.mubr.msk.bf16.gmra.mxu0 %vm225_vm2, %v173_v59  ;;  %735 = vmatmul.mubr.msk.bf16.gmra.mxu1 %vm225_vm2, %v173_v59 }
  0x94   :  { %312 = vmatprep.mubr.bf16.mxu0 %v764_v2  ;;  %425 = vmatprep.mubr.bf16.mxu1 %v764_v2  ;;  %v167_v8 = vld [vmem:[#allocation2 + $0x60] sm:$0xff]  ;;  %v168_v9 = vld [vmem:[#allocation2 + $0x68] sm:$0xff] }
  0x95   :  { %v177_v10 = vpack.c.bf16 %v168_v9, %v167_v8 }
  0x98   :  { %v169_v11 = vld [vmem:[#allocation2 + $0x70] sm:$0xff]  ;;  %v170_v12 = vld [vmem:[#allocation2 + $0x78] sm:$0xff] }
  0x99   :  { %v178_v13 = vpack.c.bf16 %v170_v12, %v169_v11 }
  0x9b   :  { %728 = vmatmul.mubr.msk.bf16.gmra.mxu0 %vm225_vm2, %v174_v0  ;;  %736 = vmatmul.mubr.msk.bf16.gmra.mxu1 %vm225_vm2, %v174_v0 }
  0x9c   :  { %322 = vmatprep.mubr.bf16.mxu0 %v764_v2  ;;  %435 = vmatprep.mubr.bf16.mxu1 %v764_v2 }
  0xa3   :  { %729 = vmatmul.mubr.msk.bf16.gmra.mxu0 %vm225_vm2, %v175_v4  ;;  %737 = vmatmul.mubr.msk.bf16.gmra.mxu1 %vm225_vm2, %v175_v4 }
  0xa4   :  { %332 = vmatprep.mubr.bf16.mxu0 %v764_v2  ;;  %445 = vmatprep.mubr.bf16.mxu1 %v764_v2 }
  0xab   :  { %730 = vmatmul.mubr.msk.bf16.gmra.mxu0 %vm225_vm2, %v176_v7  ;;  %738 = vmatmul.mubr.msk.bf16.gmra.mxu1 %vm225_vm2, %v176_v7 }
  0xac   :  { %342 = vmatprep.mubr.bf16.mxu0 %v764_v2  ;;  %455 = vmatprep.mubr.bf16.mxu1 %v764_v2 }
  0xb3   :  { %731 = vmatmul.mubr.msk.bf16.gmra.mxu0 %vm225_vm2, %v177_v10  ;;  %739 = vmatmul.mubr.msk.bf16.gmra.mxu1 %vm225_vm2, %v177_v10 }
  0xb4   :  { %352 = vmatprep.mubr.bf16.mxu0 %v764_v2  ;;  %465 = vmatprep.mubr.bf16.mxu1 %v764_v2  ;;  %v586_v2 = vunpack.c.0.s8 %v585_v20 }
  0xb6   :  { %v589_v27 = vsub.s32 %v586_v2, %v186_v15 }
  0xb8   :  { %v1004_v32 = vrot.slane %v741_v25, %v589_v27  ;;  %v597_v33 = vrot.slane %v583_v26, %v589_v27 }
  0xba   :  { %1186 = vst [vmem:[#allocation4_spill] sm:$0xff] %v1004_v32  ;;  %v599_v42 = vcombine.high %v597_v33, %v597_v33 }
  0xbb   :  { %732 = vmatmul.mubr.msk.bf16.gmra.mxu0 %vm225_vm2, %v178_v13  ;;  %740 = vmatmul.mubr.msk.bf16.gmra.mxu1 %vm225_vm2, %v178_v13 }
  0xbc   :  { %662 = vmatprep.mubr.bf16.mxu0 %v597_v33  ;;  %750 = vmatprep.mubr.msk.bf16.mxu1 %vm225_vm2, %v599_v42 }
 0x143   :  { %v284_v28 = vpop.f32.mrf.mxu0  ;;  %v397_v29 = vpop.f32.mrf.mxu1 }
 0x144   :  { %v285_v34 = vadd.f32 %v284_v28, %v993_v23  ;;  %v398_v35 = vadd.f32 %v397_v29, %v995_v24 }
 0x145   :  { %v286_v36 = vpop.f32.mrf.mxu0  ;;  %v399_v37 = vpop.f32.mrf.mxu1 }
 0x146   :  { %v287_v38 = vadd.f32 %v286_v36, %v1000_v30  ;;  %v400_v39 = vadd.f32 %v399_v37, %v1002_v31  ;;  %v476_v45 = vmax.f32 %v285_v34, 0.0  ;;  %v478_v46 = vmax.f32 %v398_v35, 0.0 }
 0x147   :  { %v288_v40 = vpop.f32.mrf.mxu0  ;;  %v401_v41 = vpop.f32.mrf.mxu1 }
 0x148   :  { %v289_v43 = vadd.f32 %v288_v40, %v993_v23  ;;  %v402_v44 = vadd.f32 %v401_v41, %v995_v24  ;;  %v477_v53 = vmax.f32 %v287_v38, 0.0  ;;  %v479_v54 = vmax.f32 %v400_v39, 0.0 }
 0x149   :  { %v290_v47 = vpop.f32.mrf.mxu0  ;;  %v403_v48 = vpop.f32.mrf.mxu1 }
 0x14a   :  { %v480_v49 = vmax.f32 %v289_v43, 0.0  ;;  %v482_v50 = vmax.f32 %v402_v44, 0.0  ;;  %v291_v51 = vadd.f32 %v290_v47, %v1000_v30  ;;  %v404_v52 = vadd.f32 %v403_v48, %v1002_v31 }
 0x14b   :  { %v294_v55 = vpop.f32.mrf.mxu0  ;;  %v407_v56 = vpop.f32.mrf.mxu1 }
 0x14c   :  { %v1015_v57 = vpack.c.bf16 %v480_v49, %v476_v45  ;;  %v1017_v58 = vpack.c.bf16 %v482_v50, %v478_v46  ;;  %v481_v59 = vmax.f32 %v291_v51, 0.0  ;;  %v483_v60 = vmax.f32 %v404_v52, 0.0 }
 0x14d   :  { %v295_v61 = vadd.f32 %v294_v55, %v993_v23  ;;  %v408_v62 = vadd.f32 %v407_v56, %v995_v24  ;;  %v296_v63 = vpop.f32.mrf.mxu0  ;;  %v409_v0 = vpop.f32.mrf.mxu1 }
 0x14e   :  { %1187 = vst [vmem:[#allocation5_spill] sm:$0xff] %v1015_v57  ;;  %1188 = vst [vmem:[#allocation6_spill] sm:$0xff] %v1017_v58  ;;  %v1021_v1 = vpack.c.bf16 %v481_v59, %v477_v53  ;;  %v1023_v3 = vpack.c.bf16 %v483_v60, %v479_v54  ;;  %v297_v4 = vadd.f32 %v296_v63, %v1000_v30 }
 0x14f   :  { %v410_v5 = vadd.f32 %v409_v0, %v1002_v31  ;;  %v298_v6 = vpop.f32.mrf.mxu0  ;;  %v411_v7 = vpop.f32.mrf.mxu1  ;;  %v484_v10 = vmax.f32 %v295_v61, 0.0  ;;  %v486_v11 = vmax.f32 %v408_v62, 0.0 }
 0x150   :  { %1189 = vst [vmem:[#allocation7_spill] sm:$0xff] %v1021_v1  ;;  %1190 = vst [vmem:[#allocation8_spill] sm:$0xff] %v1023_v3  ;;  %v299_v8 = vadd.f32 %v298_v6, %v993_v23  ;;  %v412_v9 = vadd.f32 %v411_v7, %v995_v24  ;;  %v485_v18 = vmax.f32 %v297_v4, 0.0 }
 0x151   :  { %v300_v12 = vpop.f32.mrf.mxu0  ;;  %v413_v13 = vpop.f32.mrf.mxu1  ;;  %v487_v19 = vmax.f32 %v410_v5, 0.0 }
 0x152   :  { %v488_v14 = vmax.f32 %v299_v8, 0.0  ;;  %v490_v15 = vmax.f32 %v412_v9, 0.0  ;;  %v301_v16 = vadd.f32 %v300_v12, %v1000_v30  ;;  %v414_v17 = vadd.f32 %v413_v13, %v1002_v31 }
 0x153   :  { %v304_v20 = vpop.f32.mrf.mxu0  ;;  %v417_v21 = vpop.f32.mrf.mxu1 }
 0x154   :  { %v1031_v22 = vpack.c.bf16 %v488_v14, %v484_v10  ;;  %v1033_v2 = vpack.c.bf16 %v490_v15, %v486_v11  ;;  %v489_v25 = vmax.f32 %v301_v16, 0.0  ;;  %v491_v26 = vmax.f32 %v414_v17, 0.0 }
 0x155   :  { %v305_v27 = vadd.f32 %v304_v20, %v993_v23  ;;  %v418_v28 = vadd.f32 %v417_v21, %v995_v24  ;;  %v306_v29 = vpop.f32.mrf.mxu0  ;;  %v419_v33 = vpop.f32.mrf.mxu1 }
 0x156   :  { %1191 = vst [vmem:[#allocation9_spill] sm:$0xff] %v1031_v22  ;;  %1192 = vst [vmem:[#allocation10_spill] sm:$0xff] %v1033_v2  ;;  %v1037_v34 = vpack.c.bf16 %v489_v25, %v485_v18  ;;  %v1039_v35 = vpack.c.bf16 %v491_v26, %v487_v19  ;;  %v307_v36 = vadd.f32 %v306_v29, %v1000_v30 }
 0x157   :  { %v420_v37 = vadd.f32 %v419_v33, %v1002_v31  ;;  %v308_v38 = vpop.f32.mrf.mxu0  ;;  %v421_v39 = vpop.f32.mrf.mxu1  ;;  %v492_v42 = vmax.f32 %v305_v27, 0.0  ;;  %v494_v43 = vmax.f32 %v418_v28, 0.0 }
 0x158   :  { %1193 = vst [vmem:[#allocation11_spill] sm:$0xff] %v1039_v35  ;;  %v309_v40 = vadd.f32 %v308_v38, %v993_v23  ;;  %v422_v41 = vadd.f32 %v421_v39, %v995_v24  ;;  %v493_v50 = vmax.f32 %v307_v36, 0.0 }
 0x159   :  { %v310_v44 = vpop.f32.mrf.mxu0  ;;  %v423_v45 = vpop.f32.mrf.mxu1  ;;  %v495_v51 = vmax.f32 %v420_v37, 0.0 }
 0x15a   :  { %v496_v46 = vmax.f32 %v309_v40, 0.0  ;;  %v498_v47 = vmax.f32 %v422_v41, 0.0  ;;  %v311_v48 = vadd.f32 %v310_v44, %v1000_v30  ;;  %v424_v49 = vadd.f32 %v423_v45, %v1002_v31 }
 0x15b   :  { %v314_v52 = vpop.f32.mrf.mxu0  ;;  %v427_v53 = vpop.f32.mrf.mxu1 }
 0x15c   :  { %v1047_v54 = vpack.c.bf16 %v496_v46, %v492_v42  ;;  %v1049_v55 = vpack.c.bf16 %v498_v47, %v494_v43  ;;  %v497_v56 = vmax.f32 %v311_v48, 0.0  ;;  %v499_v59 = vmax.f32 %v424_v49, 0.0 }
 0x15d   :  { %v1051_v60 = vpop.f32.mrf.mxu0  ;;  %v1053_v61 = vpop.f32.mrf.mxu1  ;;  %v315_v0 = vadd.f32 %v314_v52, %v993_v23  ;;  %v428_v4 = vadd.f32 %v427_v53, %v995_v24 }
 0x15e   :  { %v1055_v62 = vpack.c.bf16 %v497_v56, %v493_v50  ;;  %v1057_v63 = vpack.c.bf16 %v499_v59, %v495_v51 }
 0x15f   :  { %v318_v5 = vpop.f32.mrf.mxu0  ;;  %v431_v6 = vpop.f32.mrf.mxu1  ;;  %v500_v11 = vmax.f32 %v315_v0, 0.0  ;;  %v502_v12 = vmax.f32 %v428_v4, 0.0 }
 0x160   :  { %v319_v7 = vadd.f32 %v318_v5, %v993_v23  ;;  %v432_v8 = vadd.f32 %v431_v6, %v995_v24 }
 0x161   :  { %v1063_v9 = vpop.f32.mrf.mxu0  ;;  %v1065_v10 = vpop.f32.mrf.mxu1 }
 0x162   :  { %v504_v13 = vmax.f32 %v319_v7, 0.0  ;;  %v506_v14 = vmax.f32 %v432_v8, 0.0 }
 0x163   :  { %v1067_v15 = vpop.f32.mrf.mxu0  ;;  %v1069_v16 = vpop.f32.mrf.mxu1 }
 0x164   :  { %v1071_v17 = vpack.c.bf16 %v504_v13, %v500_v11  ;;  %v1073_v18 = vpack.c.bf16 %v506_v14, %v502_v12 }
 0x165   :  { %v1075_v19 = vpop.f32.mrf.mxu0  ;;  %v1077_v20 = vpop.f32.mrf.mxu1 }
 0x167   :  { %v1079_v21 = vpop.f32.mrf.mxu0  ;;  %v1081_v25 = vpop.f32.mrf.mxu1 }
 0x169   :  { %v1083_v26 = vpop.f32.mrf.mxu0  ;;  %v1085_v27 = vpop.f32.mrf.mxu1 }
 0x16b   :  { %v1087_v28 = vpop.f32.mrf.mxu0  ;;  %v1089_v29 = vpop.f32.mrf.mxu1 }
 0x16d   :  { %v336_v33 = vpop.f32.mrf.mxu0  ;;  %v449_v36 = vpop.f32.mrf.mxu1 }
 0x16f   :  { %v1091_v37 = vpop.f32.mrf.mxu0  ;;  %v1093_v38 = vpop.f32.mrf.mxu1 }
 0x171   :  { %v340_v39 = vpop.f32.mrf.mxu0  ;;  %v453_v40 = vpop.f32.mrf.mxu1 }
 0x173   :  { %v344_v41 = vpop.f32.mrf.mxu0  ;;  %v457_v42 = vpop.f32.mrf.mxu1 }
 0x175   :  { %v346_v43 = vpop.f32.mrf.mxu0  ;;  %v459_v44 = vpop.f32.mrf.mxu1 }
 0x176   :  { %v347_v14 = vadd.f32 %v346_v43, %v1000_v30 }
 0x177   :  { %v348_v45 = vpop.f32.mrf.mxu0  ;;  %v461_v46 = vpop.f32.mrf.mxu1 }
 0x178   :  { %v525_v22 = vmax.f32 %v347_v14, 0.0 }
 0x179   :  { %v350_v47 = vpop.f32.mrf.mxu0  ;;  %v463_v48 = vpop.f32.mrf.mxu1 }
 0x17a   :  { %v351_v53 = vadd.f32 %v350_v47, %v1000_v30  ;;  %v464_v56 = vadd.f32 %v463_v48, %v1002_v31  ;;  %v460_v47 = vadd.f32 %v459_v44, %v1002_v31 }
 0x17b   :  { %v354_v49 = vpop.f32.mrf.mxu0  ;;  %v467_v50 = vpop.f32.mrf.mxu1 }
 0x17c   :  { %v355_v8 = vadd.f32 %v354_v49, %v993_v23  ;;  %v468_v11 = vadd.f32 %v467_v50, %v995_v24  ;;  %v529_v32 = vmax.f32 %v351_v53, 0.0  ;;  %v341_v50 = vadd.f32 %v340_v39, %v1000_v30 }
 0x17d   :  { %v356_v51 = vpop.f32.mrf.mxu0  ;;  %v469_v52 = vpop.f32.mrf.mxu1  ;;  %v527_v43 = vmax.f32 %v460_v47, 0.0  ;;  %v345_v39 = vadd.f32 %v344_v41, %v993_v23  ;;  %v339_v41 = vadd.f32 %v1091_v37, %v993_v23  ;;  %v335_v47 = vadd.f32 %v1087_v28, %v993_v23 }
 0x17e   :  { %v357_v4 = vadd.f32 %v356_v51, %v1000_v30  ;;  %v470_v5 = vadd.f32 %v469_v52, %v1002_v31  ;;  %v531_v52 = vmax.f32 %v464_v56, 0.0  ;;  %v532_v1 = vmax.f32 %v355_v8, 0.0 }
 0x17f   :  { %v358_v59 = vpop.f32.mrf.mxu0  ;;  %v471_v0 = vpop.f32.mrf.mxu1  ;;  %v534_v2 = vmax.f32 %v468_v11, 0.0  ;;  %v444_v8 = vadd.f32 %v1085_v27, %v1002_v31  ;;  %v327_v37 = vadd.f32 %v1075_v19, %v1000_v30  ;;  %v442_v19 = vadd.f32 %v1081_v25, %v995_v24 }
 0x180   :  { %v359_v6 = vadd.f32 %v358_v59, %v993_v23  ;;  %v472_v7 = vadd.f32 %v471_v0, %v995_v24  ;;  %v533_v57 = vmax.f32 %v357_v4, 0.0  ;;  %v535_v0 = vmax.f32 %v470_v5, 0.0 }
 0x181   :  { %v360_v12 = vpop.f32.mrf.mxu0  ;;  %v473_v13 = vpop.f32.mrf.mxu1  ;;  %v566_v4 = vpack.c.bf16 %v529_v32, %v525_v22  ;;  %v568_v5 = vpack.c.bf16 %v531_v52, %v527_v43  ;;  %v521_v32 = vmax.f32 %v341_v50, 0.0  ;;  %v515_v52 = vmax.f32 %v444_v8, 0.0 }
 0x182   :  { %v361_v48 = vadd.f32 %v360_v12, %v1000_v30  ;;  %v474_v51 = vadd.f32 %v473_v13, %v1002_v31  ;;  %v536_v58 = vmax.f32 %v359_v6, 0.0  ;;  %v538_v59 = vmax.f32 %v472_v7, 0.0 }
 0x183   :  { %v349_v12 = vadd.f32 %v348_v45, %v993_v23  ;;  %v462_v13 = vadd.f32 %v461_v46, %v995_v24  ;;  %v454_v6 = vadd.f32 %v453_v40, %v1002_v31  ;;  %v458_v7 = vadd.f32 %v457_v42, %v995_v24 }
 0x184   :  { %v537_v3 = vmax.f32 %v361_v48, 0.0  ;;  %v539_v49 = vmax.f32 %v474_v51, 0.0  ;;  %v569_v53 = vpack.c.bf16 %v536_v58, %v532_v1  ;;  %v571_v56 = vpack.c.bf16 %v538_v59, %v534_v2 }
 0x185   :  { %v528_v58 = vmax.f32 %v349_v12, 0.0  ;;  %v530_v1 = vmax.f32 %v462_v13, 0.0  ;;  %v523_v22 = vmax.f32 %v454_v6, 0.0  ;;  %v524_v2 = vmax.f32 %v345_v39, 0.0 }
 0x186   :  { %v570_v35 = vpack.c.bf16 %v537_v3, %v533_v57  ;;  %v572_v44 = vpack.c.bf16 %v539_v49, %v535_v0  ;;  %v337_v57 = vadd.f32 %v336_v33, %v1000_v30  ;;  %v450_v3 = vadd.f32 %v449_v36, %v1002_v31 }
 0x187   :  { %v452_v42 = vadd.f32 %v1093_v38, %v995_v24  ;;  %v565_v33 = vpack.c.bf16 %v528_v58, %v524_v2  ;;  %v331_v36 = vadd.f32 %v1083_v26, %v1000_v30  ;;  %v448_v48 = vadd.f32 %v1089_v29, %v995_v24 }
 0x188   :  { %630 = vmatprep.subr.bf16.mxu0 %v570_v35  ;;  %742 = vmatprep.subr.msk.bf16.mxu1 %vm225_vm2, %v572_v44  ;;  %v526_v35 = vmax.f32 %v458_v7, 0.0  ;;  %v517_v40 = vmax.f32 %v337_v57, 0.0  ;;  %v519_v45 = vmax.f32 %v450_v3, 0.0  ;;  %v440_v38 = vadd.f32 %v1077_v20, %v1002_v31 }
 0x189   :  { %631 = vmatpush1.bf16.xpose.msra.mxu0 %v569_v53  ;;  %671 = vmatpush1.bf16.xpose.msra.mxu1 %v571_v56  ;;  %v520_v26 = vmax.f32 %v339_v41, 0.0  ;;  %v522_v27 = vmax.f32 %v452_v42, 0.0  ;;  %v513_v51 = vmax.f32 %v331_v36, 0.0  ;;  %v516_v59 = vmax.f32 %v335_v47, 0.0 }
 0x18a   :  { %632 = vmatprep.subr.bf16.mxu0 %v566_v4  ;;  %743 = vmatprep.subr.msk.bf16.mxu1 %vm225_vm2, %v568_v5  ;;  %v567_v46 = vpack.c.bf16 %v530_v1, %v526_v35  ;;  %v562_v11 = vpack.c.bf16 %v521_v32, %v517_v40  ;;  %v564_v14 = vpack.c.bf16 %v523_v22, %v519_v45  ;;  %v518_v28 = vmax.f32 %v448_v48, 0.0 }
 0x18b   :  { %v509_v0 = vmax.f32 %v327_v37, 0.0  ;;  %v511_v49 = vmax.f32 %v440_v38, 0.0  ;;  %v329_v29 = vadd.f32 %v1079_v21, %v993_v23  ;;  %v561_v50 = vpack.c.bf16 %v520_v26, %v516_v59 }
 0x18c   :  { %v563_v43 = vpack.c.bf16 %v522_v27, %v518_v28  ;;  %v321_v20 = vadd.f32 %v1063_v9, %v1000_v30  ;;  %v434_v44 = vadd.f32 %v1065_v10, %v1002_v31  ;;  %v325_v53 = vadd.f32 %v1067_v15, %v993_v23 }
 0x18d   :  { %v558_v12 = vpack.c.bf16 %v513_v51, %v509_v0  ;;  %v560_v13 = vpack.c.bf16 %v515_v52, %v511_v49  ;;  %v438_v56 = vadd.f32 %v1069_v16, %v995_v24  ;;  %v317_v21 = vadd.f32 %v1051_v60, %v1000_v30  ;;  %v1194_v30 = vld [vmem:[#allocation11_spill] sm:$0xff]  ;;  %v1196_v60 = vld [vmem:[#allocation10_spill] sm:$0xff] }
 0x18e   :  { %v430_v25 = vadd.f32 %v1053_v61, %v1002_v31  ;;  %v512_v9 = vmax.f32 %v329_v29, 0.0  ;;  %v514_v10 = vmax.f32 %v442_v19, 0.0  ;;  %v505_v6 = vmax.f32 %v321_v20, 0.0  ;;  %v1195_v31 = vld [vmem:[#allocation9_spill] sm:$0xff]  ;;  %v1197_v61 = vld [vmem:[#allocation7_spill] sm:$0xff] }
 0x18f   :  { %v507_v4 = vmax.f32 %v434_v44, 0.0  ;;  %v508_v5 = vmax.f32 %v325_v53, 0.0  ;;  %v510_v23 = vmax.f32 %v438_v56, 0.0  ;;  %v501_v15 = vmax.f32 %v317_v21, 0.0 }
 0x190   :  { %v503_v39 = vmax.f32 %v430_v25, 0.0 }
 0x191   :  { %633 = vmatpush1.bf16.xpose.msra.mxu0 %v565_v33  ;;  %673 = vmatpush1.bf16.xpose.msra.mxu1 %v567_v46  ;;  %v557_v24 = vpack.c.bf16 %v512_v9, %v508_v5  ;;  %v559_v16 = vpack.c.bf16 %v514_v10, %v510_v23  ;;  %v554_v7 = vpack.c.bf16 %v505_v6, %v501_v15 }
 0x192   :  { %634 = vmatprep.subr.bf16.mxu0 %v562_v11  ;;  %744 = vmatprep.subr.msk.bf16.mxu1 %vm225_vm2, %v564_v14  ;;  %v556_v57 = vpack.c.bf16 %v507_v4, %v503_v39 }
 0x199   :  { %635 = vmatpush1.bf16.xpose.msra.mxu0 %v561_v50  ;;  %675 = vmatpush1.bf16.xpose.msra.mxu1 %v563_v43 }
 0x19a   :  { %636 = vmatprep.subr.bf16.mxu0 %v558_v12  ;;  %745 = vmatprep.subr.msk.bf16.mxu1 %vm225_vm2, %v560_v13 }
 0x1a1   :  { %637 = vmatpush1.bf16.xpose.msra.mxu0 %v557_v24  ;;  %677 = vmatpush1.bf16.xpose.msra.mxu1 %v559_v16 }
 0x1a2   :  { %638 = vmatprep.subr.bf16.mxu0 %v554_v7  ;;  %746 = vmatprep.subr.msk.bf16.mxu1 %vm225_vm2, %v556_v57 }
 0x1a9   :  { %639 = vmatpush1.bf16.xpose.msra.mxu0 %v1071_v17  ;;  %679 = vmatpush1.bf16.xpose.msra.mxu1 %v1073_v18  ;;  %v1198_v17 = vld [vmem:[#allocation8_spill] sm:$0xff] }
 0x1aa   :  { %640 = vmatprep.subr.bf16.mxu0 %v1055_v62  ;;  %747 = vmatprep.subr.msk.bf16.mxu1 %vm225_vm2, %v1057_v63  ;;  %v1199_v62 = vld [vmem:[#allocation5_spill] sm:$0xff]  ;;  %v1200_v63 = vld [vmem:[#allocation6_spill] sm:$0xff] }
 0x1b1   :  { %641 = vmatpush1.bf16.xpose.msra.mxu0 %v1047_v54  ;;  %681 = vmatpush1.bf16.xpose.msra.mxu1 %v1049_v55  ;;  %v1201_v54 = vld [vmem:[#allocation4_spill] sm:$0xff] }
 0x1b2   :  { %642 = vmatprep.subr.bf16.mxu0 %v1037_v34  ;;  %748 = vmatprep.subr.msk.bf16.mxu1 %vm225_vm2, %v1194_v30  ;;  %v598_v55 = vcombine.high %v1201_v54, %v1201_v54  ;;  %v574_v34 = vstv %s1183_s5 }
 0x1b9   :  { %643 = vmatpush1.bf16.xpose.msra.mxu0 %v1195_v31  ;;  %683 = vmatpush1.bf16.xpose.msra.mxu1 %v1196_v60 }
 0x1ba   :  { %644 = vmatprep.subr.bf16.mxu0 %v1197_v61  ;;  %749 = vmatprep.subr.msk.bf16.mxu1 %vm225_vm2, %v1198_v17 }
 0x1c1   :  { %645 = vmatpush1.bf16.xpose.msra.mxu0 %v1199_v62  ;;  %685 = vmatpush1.bf16.xpose.msra.mxu1 %v1200_v63 }
 0x1c8   :  { %663 = vmatmul.mubr.bf16.vlgmr.msra.gmra.mxu0 %v1201_v54  ;;  %703 = vmatmul.mubr.bf16.vlgmr.msra.gmra.mxu1 %v598_v55 }
 0x288   :  { %v664_v18 = vpop.f32.mrf.mxu0  ;;  %v704_v3 = vpop.f32.mrf.mxu1 }
 0x289   :  { %v665_v58 = vadd.f32 %v664_v18, %v574_v34 }
 0x28a   :  { %v666_v1 = vpop.f32.mrf.mxu0  ;;  %v706_v32 = vpop.f32.mrf.mxu1 }
 0x28b   :  { %v705_v22 = vadd.f32 %v704_v3, %v665_v58 }
 0x28c   :  { %v667_v2 = vpop.f32.mrf.mxu0  ;;  %v707_v35 = vpop.f32.mrf.mxu1 }
 0x28d   :  { %v710_v40 = vsub.f32 0.0, %v705_v22 }
 0x28e   :  { %v668_v45 = vpop.f32.mrf.mxu0  ;;  %v708_v41 = vpop.f32.mrf.mxu1 }
 0x28f   :  { %v711_v42 = vmul.f32 1.442695, %v710_v40 }
 0x291   :  { %760 = vpow2.f32 %v711_v42 }
 0x29e   :  { %v761_v33 = vpop.eup %760 }
 0x29f   :  { %v713_v46 = vadd.f32 1.0, %v761_v33 }
 0x2a1   :  { %762 = vrcp.f32 %v713_v46 }
 0x2ae   :  { %v763_v36 = vpop.eup %762 }
 0x2af   :  { %716 = vst [vmem:[%s1184_s6] sm:$0x1] %v763_v36 }

</bundles_post_ra>
